<compile_context>
chip_gen: v7x
topology: tpu7x:2x2x1
jax: 0.10.0
libtpu: 0.0.40
codegen_flags: <defaults>
</compile_context>

<pallas_src>
import jax
import jax.numpy as jnp
from jax.experimental import pallas as pl
from jax.experimental.pallas import tpu as pltpu


def fc_sigmoid_kernel(x_ref, w_ref, b_ref, o_ref):
    # x_ref: (F_in, B) f32 in VMEM  -- features on sublanes, batch on lanes.
    # w_ref: (F_in,)  f32 in SMEM   -- one scalar weight per feature.
    # b_ref: (1,)     f32 in SMEM   -- bias scalar.
    # o_ref: (1, B)   f32 in VMEM   -- lane-dense output row.
    x = x_ref[...]                                   # (F_in, B)
    f_in = x.shape[0]

    # Unrolled broadcast-FMA on the VPU: z = b + sum_k w[k] * x[k, :]
    acc = b_ref[0] + w_ref[0] * x[0:1, :]            # (1, B)
    for k in range(1, f_in):
        acc = acc + w_ref[k] * x[k:k + 1, :]

    # exp lands on the EUP; VALU stays free for the FMAs above.
    o_ref[...] = jax.nn.sigmoid(acc)


def fully_connected_net(x, w, b):
    """x: (B, 6) f32, w: (6,) f32, b: (1,) f32 -> (B, 1) f32."""
    B, F_in = x.shape
    x_t = x.T  # (F_in, B): put batch on the lane axis for the kernel.

    out_t = pl.pallas_call(
        fc_sigmoid_kernel,
        out_shape=jax.ShapeDtypeStruct((1, B), jnp.float32),
        in_specs=[
            pl.BlockSpec(memory_space=pltpu.MemorySpace.VMEM),   # x_t, whole array
            pl.BlockSpec(memory_space=pltpu.MemorySpace.SMEM),   # w scalars
            pl.BlockSpec(memory_space=pltpu.MemorySpace.SMEM),   # b scalar
        ],
        out_specs=pl.BlockSpec(memory_space=pltpu.MemorySpace.VMEM),
    )(x_t, w, b)

    # Back to the module's (B, 1) output layout in the wrapper (layout plumbing
    # stays outside the kernel).
    return out_t.T


if __name__ == "__main__":
    key = jax.random.PRNGKey(0)
    k_x, k_w, k_b = jax.random.split(key, 3)

    batch = 8
    in_features, out_features = 6, 1

    # Deterministic parameter init mimicking nn.Linear's default:
    # U(-1/sqrt(fan_in), 1/sqrt(fan_in)); PyTorch stores weight as (out, in).
    bound = 1.0 / jnp.sqrt(jnp.float32(in_features))
    w_torch = jax.random.uniform(
        k_w, (out_features, in_features), jnp.float32, -bound, bound
    )
    b = jax.random.uniform(k_b, (out_features,), jnp.float32, -bound, bound)

    x = jax.random.normal(k_x, (batch, in_features), dtype=jnp.float32)

    w_flat = w_torch.reshape(in_features)  # (6,) scalar weights for SMEM

    out = fully_connected_net(x, w_flat, b)
    out = jax.block_until_ready(out)

    # Reference check in plain JAX (same f32 math as the kernel).
    ref = jax.nn.sigmoid(x @ w_torch.T + b)
    assert out.shape == (batch, out_features)
    assert jnp.allclose(out, ref, atol=1e-5, rtol=1e-5)

    print("KERNEL_OK")
</pallas_src>

<mosaic_0001>
module attributes {stable_mosaic.version = 11 : i64} {
  func.func @fc_sigmoid_kernel(%arg0: memref<6x8xf32, #tpu.memory_space<vmem>>, %arg1: memref<6xf32, #tpu.memory_space<smem>>, %arg2: memref<1xf32, #tpu.memory_space<smem>>, %arg3: memref<1x8xf32, #tpu.memory_space<vmem>>) attributes {dimension_semantics = [], scalar_prefetch = 0 : i64, scratch_operands = 0 : i64, tpu.core_type = #tpu.core_type<tc>} {
    %c0 = arith.constant 0 : index
    %c0_0 = arith.constant 0 : index
    %0 = vector.load %arg0[%c0, %c0_0] : memref<6x8xf32, #tpu.memory_space<vmem>>, vector<6x8xf32>
    %c0_1 = arith.constant 0 : index
    %1 = memref.load %arg2[%c0_1] : memref<1xf32, #tpu.memory_space<smem>>
    %c0_2 = arith.constant 0 : index
    %2 = memref.load %arg1[%c0_2] : memref<6xf32, #tpu.memory_space<smem>>
    %3 = vector.extract_strided_slice %0 {offsets = [0, 0], sizes = [1, 8], strides = [1, 1]} : vector<6x8xf32> to vector<1x8xf32>
    %4 = vector.broadcast %2 : f32 to vector<1x8xf32>
    %5 = arith.mulf %4, %3 : vector<1x8xf32>
    %6 = vector.broadcast %1 : f32 to vector<1x8xf32>
    %7 = arith.addf %6, %5 : vector<1x8xf32>
    %c1 = arith.constant 1 : index
    %8 = memref.load %arg1[%c1] : memref<6xf32, #tpu.memory_space<smem>>
    %9 = vector.extract_strided_slice %0 {offsets = [1, 0], sizes = [1, 8], strides = [1, 1]} : vector<6x8xf32> to vector<1x8xf32>
    %10 = vector.broadcast %8 : f32 to vector<1x8xf32>
    %11 = arith.mulf %10, %9 : vector<1x8xf32>
    %12 = arith.addf %7, %11 : vector<1x8xf32>
    %c2 = arith.constant 2 : index
    %13 = memref.load %arg1[%c2] : memref<6xf32, #tpu.memory_space<smem>>
    %14 = vector.extract_strided_slice %0 {offsets = [2, 0], sizes = [1, 8], strides = [1, 1]} : vector<6x8xf32> to vector<1x8xf32>
    %15 = vector.broadcast %13 : f32 to vector<1x8xf32>
    %16 = arith.mulf %15, %14 : vector<1x8xf32>
    %17 = arith.addf %12, %16 : vector<1x8xf32>
    %c3 = arith.constant 3 : index
    %18 = memref.load %arg1[%c3] : memref<6xf32, #tpu.memory_space<smem>>
    %19 = vector.extract_strided_slice %0 {offsets = [3, 0], sizes = [1, 8], strides = [1, 1]} : vector<6x8xf32> to vector<1x8xf32>
    %20 = vector.broadcast %18 : f32 to vector<1x8xf32>
    %21 = arith.mulf %20, %19 : vector<1x8xf32>
    %22 = arith.addf %17, %21 : vector<1x8xf32>
    %c4 = arith.constant 4 : index
    %23 = memref.load %arg1[%c4] : memref<6xf32, #tpu.memory_space<smem>>
    %24 = vector.extract_strided_slice %0 {offsets = [4, 0], sizes = [1, 8], strides = [1, 1]} : vector<6x8xf32> to vector<1x8xf32>
    %25 = vector.broadcast %23 : f32 to vector<1x8xf32>
    %26 = arith.mulf %25, %24 : vector<1x8xf32>
    %27 = arith.addf %22, %26 : vector<1x8xf32>
    %c5 = arith.constant 5 : index
    %28 = memref.load %arg1[%c5] : memref<6xf32, #tpu.memory_space<smem>>
    %29 = vector.extract_strided_slice %0 {offsets = [5, 0], sizes = [1, 8], strides = [1, 1]} : vector<6x8xf32> to vector<1x8xf32>
    %30 = vector.broadcast %28 : f32 to vector<1x8xf32>
    %31 = arith.mulf %30, %29 : vector<1x8xf32>
    %32 = arith.addf %27, %31 : vector<1x8xf32>
    %33 = arith.negf %32 : vector<1x8xf32>
    %34 = math.exp %33 : vector<1x8xf32>
    %cst = arith.constant 1.000000e+00 : f32
    %35 = vector.broadcast %cst : f32 to vector<1x8xf32>
    %36 = arith.addf %35, %34 : vector<1x8xf32>
    %37 = arith.divf %35, %36 : vector<1x8xf32>
    %c0_3 = arith.constant 0 : index
    %c0_4 = arith.constant 0 : index
    %38 = vector.load %arg3[%c0_3, %c0_4] : memref<1x8xf32, #tpu.memory_space<vmem>>, vector<1x8xf32>
    tpu.vector_store %arg3[%c0_3, %c0_4], %37 {strides = array<i32>} : memref<1x8xf32, #tpu.memory_space<vmem>>, vector<1x8xf32>,
    return
  }
}

</mosaic_0001>

<bundles_post_ra>
// kernel: tpu_custom_call.1
= control target key start
LH: loop header
LB: loop body
LE: loop exit
PB: predicated region body
PF: predicated region fallthrough
CT: control target
= control target key end

     0   :  { %9 = vsyncpa [#allocation4], 0  ;;  %s235_s0 = inlined_call_operand.hbm [shape: f32[6,8], index: 0, kind: input, shape index: {}]   ;;  %s236_s1 = inlined_call_operand.vmem [shape: f32[6], index: 1, kind: input, shape index: {}]   ;;  %s237_s2 = inlined_call_operand.<no memory space> [shape: f32[1], index: 2, kind: input, shape index: {}]   ;;  %s238_s3 = inlined_call_operand.hbm [shape: f32[1,8], index: 3, kind: output, shape index: {}]  }
   0x1   :  { %10 = vsyncpa [#allocation6], 0 }
   0x2   :  { %11 = vsyncpa [#allocation5], 0  ;;  %s28_s14 = sshll.u32 %s236_s1, 4  ;;  %s182_s15 = smov [#allocation3]   ;;  %s29_s14 = int_to_ptr.vmem [resolvable:$true] %s28_s14 }
   0x3   :  { %s18_s16 = sshll.u32 %s182_s15, 4  ;;  %s120_s19 = scalar_lea.hbm %s235_s0, 128  ;;  %s19_s16 = int_to_ptr.vmem [resolvable:$true] %s18_s16 }
   0x4   :  { %p121_p0 = scmp.ne.s32.totalorder %s235_s0, %s120_s19  ;;  %p124_p1 = scmp.lt.u32.totalorder %s120_s19, %s235_s0 }
   0x6   :  { %p126_p2 = pnand %p124_p1, %p121_p0 }
   0x8   :  { %129 = shalt.err (!%p126_p2)
}
   0x9   :  { %s130_s24 = scalar_lea.vmem %s19_s16, 128  ;;  %p135_p4 = scmp.lt.s32.totalorder %s19_s16, %s19_s16 }
   0xa   :  { %p131_p3 = scmp.ne.s32.totalorder %s19_s16, %s130_s24  ;;  %p136_p5 = scmp.lt.s32.totalorder %s130_s24, %s130_s24 }
   0xc   :  { %p137_p6 = por %p136_p5, %p135_p4 }
   0xe   :  { %p138_p7 = pnand %p137_p6, %p131_p3 }
  0x10   :  { %141 = shalt.err (!%p138_p7)
}
  0x11   :  { %21 = dma.hbm_to_vmem [thread:$0]  %s235_s0, 128, %s19_s16, [#allocation4]  }
  0x12   :  { %s142_s26 = scalar_lea.vmem %s29_s14, 16  ;;  %p147_p9 = scmp.lt.s32.totalorder %s29_s14, %s29_s14 }
  0x13   :  { %p143_p8 = scmp.ne.s32.totalorder %s29_s14, %s142_s26  ;;  %p148_p10 = scmp.lt.s32.totalorder %s142_s26, %s142_s26 }
  0x15   :  { %p149_p11 = por %p148_p10, %p147_p9 }
  0x17   :  { %p150_p12 = pnand %p149_p11, %p143_p8 }
  0x19   :  { %153 = shalt.err (!%p150_p12)
}
  0x1a   :  { %s183_s27 = smov [#allocation7]  }
  0x1b   :  { %31 = dma.vmem_to_smem %s29_s14, 16, %s183_s27, [#allocation6]  }
  0x1c   :  { %176 = dma.done.wait [#allocation4], 128  }
  0x1d   :  { %177 = vsyncadd [#allocation4], 4294967168 }
  0x1e   :  { %178 = dma.done.wait [#allocation6], 16  }
  0x1f   :  { %179 = vsyncadd [#allocation6], 4294967280 }
  0x20   :  { %40 = sfence }
  0x21   :  { %s43_s28 = sld [smem:[#allocation7]]  ;;  %s107_s29 = sld [smem:[#allocation7 + $0x1]]  ;;  %v41_v0 = vld [vmem:[#allocation3] sm:$0x3f]  ;;  %v46_v2 = vstv %s237_s2  ;;  %vm89_vm0 = vcmask 57344  }
  0x22   :  { %s108_s30 = sld [smem:[#allocation7 + $0x2]]  ;;  %s109_s4 = sld [smem:[#allocation7 + $0x3]] }
  0x23   :  { %s110_s5 = sld [smem:[#allocation7 + $0x4]]  ;;  %s111_s0 = sld [smem:[#allocation7 + $0x5]] }
  0x24   :  { %s184_s2 = smov [#allocation8]  }
  0x25   :  { %s97_s8 = sshll.u32 %s184_s2, 4  ;;  %s98_s8 = int_to_ptr.vmem [resolvable:$true] %s97_s8 }
  0x26   :  { %s154_s9 = scalar_lea.vmem %s98_s8, 16  ;;  %s158_s10 = scalar_lea.vmem %s98_s8, 32 }
  0x27   :  { %v44_v1 = vstv %s43_s28  ;;  %v49_v3 = vstv %s107_s29  ;;  %p155_p13 = scmp.ne.s32.totalorder %s98_s8, %s154_s9  ;;  %p159_p0 = scmp.lt.s32.totalorder %s98_s8, %s98_s8 }
  0x28   :  { %v45_v4 = vmul.f32 %v44_v1, %v41_v0  ;;  %v50_v5 = vmul.f32 %v49_v3, %v41_v0  ;;  %v56_v6 = vstv %s108_s30  ;;  %v63_v7 = vstv %s109_s4  ;;  %p160_p1 = scmp.lt.s32.totalorder %s158_s10, %s154_s9 }
  0x29   :  { %v57_v8 = vmul.f32 %v56_v6, %v41_v0  ;;  %v64_v9 = vmul.f32 %v63_v7, %v41_v0  ;;  %v70_v10 = vstv %s110_s5  ;;  %v77_v11 = vstv %s111_s0 }
  0x2a   :  { %v47_v12 = vadd.f32 %v46_v2, %v45_v4  ;;  %v52_v13 = vrot.slane %v50_v5, 1  ;;  %v71_v14 = vmul.f32 %v70_v10, %v41_v0  ;;  %v78_v18 = vmul.f32 %v77_v11, %v41_v0  ;;  %p161_p2 = por %p160_p1, %p159_p0 }
  0x2b   :  { %v59_v15 = vrot.slane %v57_v8, 2  ;;  %v66_v17 = vrot.slane %v64_v9, 3 }
  0x2c   :  { %v54_v16 = vadd.f32 %v52_v13, %v47_v12  ;;  %v73_v20 = vrot.slane %v71_v14, 4  ;;  %v80_v22 = vrot.slane %v78_v18, 5  ;;  %p162_p3 = pnand %p161_p2, %p155_p13 }
  0x2e   :  { %v61_v19 = vadd.f32 %v59_v15, %v54_v16 }
  0x30   :  { %v68_v21 = vadd.f32 %v66_v17, %v61_v19 }
  0x32   :  { %v75_v23 = vadd.f32 %v73_v20, %v68_v21 }
  0x34   :  { %v82_v24 = vadd.f32 %v80_v22, %v75_v23 }
  0x36   :  { %v112_v25 = vmul.f32 -1.442695, %v82_v24 }
  0x38   :  { %116 = vpow2.f32 %v112_v25 }
  0x42   :  { %v117_v26 = vpop.eup %116 }
  0x43   :  { %v86_v27 = vadd.f32 1.0, %v117_v26 }
  0x45   :  { %118 = vrcp.f32 %v86_v27 }
  0x4f   :  { %v119_v28 = vpop.eup %118 }
  0x50   :  { %90 = vst.msk [vmem:[#allocation8] sm:$0x1] %vm89_vm0, %v119_v28 }
  0x51   :  { %165 = shalt.err (!%p162_p3)
}
  0x52   :  { %s166_s13 = scalar_lea.hbm %s238_s3, 16 }
  0x53   :  { %p167_p4 = scmp.ne.s32.totalorder %s238_s3, %s166_s13  ;;  %p170_p5 = scmp.lt.u32.totalorder %s166_s13, %s238_s3 }
  0x55   :  { %p172_p6 = pnand %p170_p5, %p167_p4 }
  0x57   :  { %175 = shalt.err (!%p172_p6)
}
  0x58   :  { %100 = dma.vmem_to_hbm [thread:$0]  %s98_s8, 16, %s238_s3, [#allocation5]  }
  0x59   :  { %180 = dma.done.wait [#allocation5], 16  }
  0x5a   :  { %181 = vsyncadd [#allocation5], 4294967280 }
  0x5b   :  { %104 = vsyncpa [#allocation4], 1 }
  0x5c   :  { %105 = vsyncpa [#allocation5], 1 }
  0x5d   :  { %106 = vsyncpa [#allocation6], 1 }

</bundles_post_ra>
